<compile_context>
chip_gen: v6e
topology: v6e:2x2x1
jax: 0.10.0
libtpu: 0.0.40
codegen_flags: <defaults>
</compile_context>

<pallas_src>
import numpy as np
import jax
import jax.numpy as jnp
from jax import lax
from jax.experimental import pallas as pl
from jax.experimental.pallas import tpu as pltpu

HIDDEN = 32  # fixed hidden width from the PyTorch module


def _layer_dims(dim_in, latent_dim):
    # (fan_in, fan_out) for: encoder (5), sigma_nn (2), decoder (5)
    return (
        [(dim_in, HIDDEN), (HIDDEN, HIDDEN), (HIDDEN, HIDDEN), (HIDDEN, HIDDEN), (HIDDEN, latent_dim)]
        + [(latent_dim, latent_dim), (latent_dim, latent_dim)]
        + [(latent_dim, HIDDEN), (HIDDEN, HIDDEN), (HIDDEN, HIDDEN), (HIDDEN, HIDDEN), (HIDDEN, dim_in)]
    )


def pack_params(params, dim_in, latent_dim):
    """Pack 12 (W, b) pairs (torch convention: W (fan_out, fan_in), b (fan_out,))
    into one f32 slab of augmented rows [W | b].  Returns (slab, meta) where
    meta = tuple of (row_offset, fan_out, fan_in) per layer (static)."""
    dims = _layer_dims(dim_in, latent_dim)
    assert len(params) == len(dims)
    cols = max(fi for fi, _ in dims) + 1          # +1 column for the bias
    meta, row = [], 0
    for fi, fo in dims:
        meta.append((row, fo, fi))
        row += -(-fo // 8) * 8                    # 8-align row offsets (sublanes)
    slab = np.zeros((row, cols), np.float32)
    for (off, fo, fi), (w, b) in zip(meta, params):
        slab[off:off + fo, :fi] = np.asarray(w, np.float32)
        slab[off:off + fo, fi] = np.asarray(b, np.float32)
    return jnp.asarray(slab), tuple(meta)


def _make_vae_kernel(meta, compute_dtype):
    enc, sig, dec = meta[:5], meta[5:7], meta[7:12]
    cdt = compute_dtype

    def kernel(x_ref, eps_ref, w_ref, recon_ref, mu_ref, sig_ref):
        # Activations are feature-major (features, block_batch): batch on the lane axis,
        # so every tanh/exp and every store is lane-dense.
        def wb(m):
            off, fo, fi = m
            w = w_ref[off:off + fo, 0:fi].astype(cdt)      # (fan_out, fan_in), static slice
            b = w_ref[off:off + fo, fi:fi + 1]             # (fan_out, 1) f32
            return w, b

        def lin(h, m):                                     # -> f32 (fan_out, bb)
            w, b = wb(m)
            return jnp.dot(w, h.astype(cdt), preferred_element_type=jnp.float32) + b

        def lin_tanh(h, m):                                # tanh in compute_dtype (EUP)
            return jnp.tanh(lin(h, m).astype(cdt))

        # ---- encoder ----
        # first layer: x arrives row-major (bb, d_in); contract last<->last so the result
        # is already feature-major (HIDDEN, bb) -- no explicit transpose of x needed.
        w1, b1 = wb(enc[0])
        pre = lax.dot_general(w1, x_ref[...].astype(cdt),
                              (((1,), (1,)), ((), ())),
                              preferred_element_type=jnp.float32) + b1
        h = jnp.tanh(pre.astype(cdt))
        for m in enc[1:-1]:
            h = lin_tanh(h, m)
        mu = lin(h, enc[-1])                               # (latent, bb) f32

        # ---- sigma_nn: Linear -> Tanh -> Linear ----
        s = lin_tanh(mu, sig[0])
        sigma_log = lin(s, sig[1])                         # (latent, bb) f32

        # ---- reparameterization (num == 1): z = mu + eps * exp(sigma_log / 2) ----
        z = mu + eps_ref[...] * jnp.exp(0.5 * sigma_log)   # f32

        # ---- decoder ----
        h = lin_tanh(z, dec[0])
        for m in dec[1:-1]:
            h = lin_tanh(h, m)
        recon = lin(h, dec[-1])                            # (d_in, bb) f32

        # ---- stores: transpose back to row-major (bb, feat) and write final layout ----
        # (d_in / latent are multiples of 8 here -> native XLU transpose path; other sizes
        #  stay correct but may take a slower relayout.)
        recon_ref[...] = jnp.transpose(recon, (1, 0)).astype(recon_ref.dtype)
        mu_ref[...] = jnp.transpose(mu, (1, 0)).astype(mu_ref.dtype)
        sig_ref[...] = jnp.transpose(sigma_log, (1, 0)).astype(sig_ref.dtype)

    return kernel


def _pick_block_batch(n_rows, requested):
    """Lane-dense batch tile: multiple of 128; keep >= 4 grid steps on large batches
    (v7x has 2 TensorCores and we want double-buffering headroom).  n_rows >= 128."""
    bb = max(128, (int(requested) // 128) * 128)
    cap = max(128, ((n_rows // 4) // 128) * 128)
    return min(bb, cap)


def vae_forward(x, eps, slab, meta, *, block_batch=4096,
                compute_dtype=jnp.bfloat16, out_dtype=None):
    """Full VAE forward pass in one Pallas kernel.

    x:    (N, dim_in)    float  (natural row-major layout, no wrapper transpose)
    eps:  (latent, N)    float  -- noise generated directly in lane layout
    slab, meta: from pack_params()
    Returns (reconstruction (N, dim_in), mu (N, latent), sigma_log (N, latent)).
    """
    N0, d_in = x.shape
    latent = eps.shape[0]
    assert eps.shape == (latent, N0)
    out_dtype = x.dtype if out_dtype is None else out_dtype

    # Tiny batches: pad up to one 128-row tile (keeps every block lane/sublane friendly).
    if N0 < 128:
        x = jnp.pad(x, ((0, 128 - N0), (0, 0)))
        eps = jnp.pad(eps, ((0, 0), (0, 128 - N0)))
    N = x.shape[0]

    bb = _pick_block_batch(N, block_batch)
    grid = (pl.cdiv(N, bb),)                    # ragged tail handled by block masking

    in_specs = [
        pl.BlockSpec((bb, d_in), lambda i: (i, 0)),
        pl.BlockSpec((latent, bb), lambda i: (0, i)),
        pl.BlockSpec(slab.shape, lambda i: (0, 0)),   # whole param slab, VMEM-resident
    ]
    out_specs = [
        pl.BlockSpec((bb, d_in), lambda i: (i, 0)),
        pl.BlockSpec((bb, latent), lambda i: (i, 0)),
        pl.BlockSpec((bb, latent), lambda i: (i, 0)),
    ]
    out_shape = [
        jax.ShapeDtypeStruct((N, d_in), out_dtype),     # reconstruction
        jax.ShapeDtypeStruct((N, latent), out_dtype),   # mu
        jax.ShapeDtypeStruct((N, latent), out_dtype),   # sigma_log
    ]

    isz = jnp.dtype(x.dtype).itemsize
    osz = jnp.dtype(out_dtype).itemsize
    flops = 2 * N * sum(fo * fi for _, fo, fi in meta)
    transcendentals = N * (8 * HIDDEN + 2 * latent)     # 9 tanh layers + exp
    bytes_accessed = (isz * (x.size + eps.size) + 4 * slab.size
                      + osz * N * (d_in + 2 * latent))

    recon, mu, sigma_log = pl.pallas_call(
        _make_vae_kernel(meta, compute_dtype),
        grid=grid,
        in_specs=in_specs,
        out_specs=out_specs,
        out_shape=out_shape,
        compiler_params=pltpu.CompilerParams(dimension_semantics=("parallel",)),
        cost_estimate=pl.CostEstimate(
            flops=flops, transcendentals=transcendentals, bytes_accessed=bytes_accessed),
    )(x, eps, slab)

    if N != N0:
        recon, mu, sigma_log = recon[:N0], mu[:N0], sigma_log[:N0]
    return recon, mu, sigma_log


def init_vae_params(key, dim_in, latent_dim):
    """torch.nn.Linear-style init: W (fan_out, fan_in), b (fan_out,), U(+/-1/sqrt(fan_in))."""
    params = []
    for fan_in, fan_out in _layer_dims(dim_in, latent_dim):
        key, kw, kb = jax.random.split(key, 3)
        bound = 1.0 / float(fan_in) ** 0.5
        w = jax.random.uniform(kw, (fan_out, fan_in), jnp.float32, -bound, bound)
        b = jax.random.uniform(kb, (fan_out,), jnp.float32, -bound, bound)
        params.append((w, b))
    return params


def vae_reference(x, eps, params):
    """Pure-JAX reference of the PyTorch forward().  eps: (N, latent)."""
    def lin(h, p):
        w, b = p
        return jnp.dot(h, w.T, preferred_element_type=jnp.float32) + b

    h = x
    for p in params[:4]:
        h = jnp.tanh(lin(h, p))
    mu = lin(h, params[4])
    s = jnp.tanh(lin(mu, params[5]))
    sigma_log = lin(s, params[6])
    z = mu + eps * jnp.exp(0.5 * sigma_log)
    h = z
    for p in params[7:11]:
        h = jnp.tanh(lin(h, p))
    recon = lin(h, params[11])
    return recon, mu, sigma_log


if __name__ == "__main__":
    key = jax.random.PRNGKey(0)
    batch, dim_in, latent_dim = 16, 16, 8
    sigma_z = 1.0

    k_x, k_eps, k_p, k_x2, k_eps2 = jax.random.split(key, 5)
    x = jax.random.normal(k_x, (batch, dim_in), jnp.float32)
    # epsilon ~ Normal(0, sigma_z), generated directly in (latent, N) lane layout
    eps = sigma_z * jax.random.normal(k_eps, (latent_dim, batch), jnp.float32)

    params = init_vae_params(k_p, dim_in, latent_dim)
    slab, meta = pack_params(params, dim_in, latent_dim)

    # --- 1) f32 compute path: strict correctness check against the reference ---
    recon, mu, sigma_log = vae_forward(x, eps, slab, meta, compute_dtype=jnp.float32)
    jax.block_until_ready(recon)
    jax.block_until_ready(mu)
    jax.block_until_ready(sigma_log)
    assert recon.shape == (batch, dim_in)
    assert mu.shape == (batch, latent_dim)
    assert sigma_log.shape == (batch, latent_dim)

    r_ref, m_ref, s_ref = vae_reference(x, eps.T, params)
    assert np.allclose(np.asarray(recon), np.asarray(r_ref), rtol=1e-4, atol=1e-4)
    assert np.allclose(np.asarray(mu), np.asarray(m_ref), rtol=1e-4, atol=1e-4)
    assert np.allclose(np.asarray(sigma_log), np.asarray(s_ref), rtol=1e-4, atol=1e-4)

    # --- 2) default bf16-MXU/EUP path on a larger, ragged batch (multi-step grid + tail) ---
    n2 = 515
    x2 = jax.random.normal(k_x2, (n2, dim_in), jnp.float32)
    eps2 = sigma_z * jax.random.normal(k_eps2, (latent_dim, n2), jnp.float32)
    recon2, mu2, sigma_log2 = vae_forward(x2, eps2, slab, meta)   # compute_dtype=bf16
    jax.block_until_ready(recon2)
    assert recon2.shape == (n2, dim_in) and mu2.shape == (n2, latent_dim)

    r2, m2, s2 = vae_reference(x2, eps2.T, params)
    assert np.allclose(np.asarray(recon2, np.float32), np.asarray(r2), rtol=1e-1, atol=1e-1)
    assert np.allclose(np.asarray(mu2, np.float32), np.asarray(m2), rtol=1e-1, atol=1e-1)
    assert np.allclose(np.asarray(sigma_log2, np.float32), np.asarray(s2), rtol=1e-1, atol=1e-1)

    print("KERNEL_OK")
</pallas_src>

<mosaic_0001>
module attributes {stable_mosaic.version = 11 : i64} {
  func.func @kernel(%arg0: i32, %arg1: memref<128x16xf32, #tpu.memory_space<vmem>>, %arg2: memref<8x128xf32, #tpu.memory_space<vmem>>, %arg3: memref<296x33xf32, #tpu.memory_space<vmem>>, %arg4: memref<128x16xf32, #tpu.memory_space<vmem>>, %arg5: memref<128x8xf32, #tpu.memory_space<vmem>>, %arg6: memref<128x8xf32, #tpu.memory_space<vmem>>) attributes {dimension_semantics = [#tpu.dimension_semantics<parallel>], iteration_bounds = array<i64: 1>, scalar_prefetch = 0 : i64, scratch_operands = 0 : i64, tpu.core_type = #tpu.core_type<tc>, window_params = [{transform_indices = @transform_0, window_bounds = array<i64: 128, 16>}, {transform_indices = @transform_1, window_bounds = array<i64: 8, 128>}, {pipeline_mode = #tpu.pipeline_mode<synchronous>, transform_indices = @transform_2, window_bounds = array<i64: 296, 33>}, {transform_indices = @transform_3, window_bounds = array<i64: 128, 16>}, {transform_indices = @transform_4, window_bounds = array<i64: 128, 8>}, {transform_indices = @transform_5, window_bounds = array<i64: 128, 8>}]} {
    %c0 = arith.constant 0 : index
    %c0_0 = arith.constant 0 : index
    %0 = vector.load %arg3[%c0, %c0_0] : memref<296x33xf32, #tpu.memory_space<vmem>>, vector<32x16xf32>
    %c0_1 = arith.constant 0 : index
    %c16 = arith.constant 16 : index
    %1 = vector.load %arg3[%c0_1, %c16] : memref<296x33xf32, #tpu.memory_space<vmem>>, vector<32x1xf32>
    %c0_2 = arith.constant 0 : index
    %c0_3 = arith.constant 0 : index
    %2 = vector.load %arg1[%c0_2, %c0_3] : memref<128x16xf32, #tpu.memory_space<vmem>>, vector<128x16xf32>
    %cst = arith.constant dense<0.000000e+00> : vector<32x128xf32>
    %3 = tpu.matmul %0, %2, %cst {dimension_numbers = #tpu.dot_dimension_numbers<[1], [1], [0], [0], [0, 0, 1, 0], [], []>} : vector<32x16xf32>, vector<128x16xf32>, vector<32x128xf32> -> vector<32x128xf32>
    %4 = vector.broadcast %1 : vector<32x1xf32> to vector<32x128xf32>
    %5 = arith.addf %3, %4 : vector<32x128xf32>
    %6 = math.tanh %5 : vector<32x128xf32>
    %c32 = arith.constant 32 : index
    %c0_4 = arith.constant 0 : index
    %7 = vector.load %arg3[%c32, %c0_4] : memref<296x33xf32, #tpu.memory_space<vmem>>, vector<32x32xf32>
    %c32_5 = arith.constant 32 : index
    %c32_6 = arith.constant 32 : index
    %8 = vector.load %arg3[%c32_5, %c32_6] : memref<296x33xf32, #tpu.memory_space<vmem>>, vector<32x1xf32>
    %cst_7 = arith.constant dense<0.000000e+00> : vector<32x128xf32>
    %9 = tpu.matmul %7, %6, %cst_7 {dimension_numbers = #tpu.dot_dimension_numbers<[1], [0], [0], [1], [0, 0, 1, 1], [], []>} : vector<32x32xf32>, vector<32x128xf32>, vector<32x128xf32> -> vector<32x128xf32>
    %10 = vector.broadcast %8 : vector<32x1xf32> to vector<32x128xf32>
    %11 = arith.addf %9, %10 : vector<32x128xf32>
    %12 = math.tanh %11 : vector<32x128xf32>
    %c64 = arith.constant 64 : index
    %c0_8 = arith.constant 0 : index
    %13 = vector.load %arg3[%c64, %c0_8] : memref<296x33xf32, #tpu.memory_space<vmem>>, vector<32x32xf32>
    %c64_9 = arith.constant 64 : index
    %c32_10 = arith.constant 32 : index
    %14 = vector.load %arg3[%c64_9, %c32_10] : memref<296x33xf32, #tpu.memory_space<vmem>>, vector<32x1xf32>
    %cst_11 = arith.constant dense<0.000000e+00> : vector<32x128xf32>
    %15 = tpu.matmul %13, %12, %cst_11 {dimension_numbers = #tpu.dot_dimension_numbers<[1], [0], [0], [1], [0, 0, 1, 1], [], []>} : vector<32x32xf32>, vector<32x128xf32>, vector<32x128xf32> -> vector<32x128xf32>
    %16 = vector.broadcast %14 : vector<32x1xf32> to vector<32x128xf32>
    %17 = arith.addf %15, %16 : vector<32x128xf32>
    %18 = math.tanh %17 : vector<32x128xf32>
    %c96 = arith.constant 96 : index
    %c0_12 = arith.constant 0 : index
    %19 = vector.load %arg3[%c96, %c0_12] : memref<296x33xf32, #tpu.memory_space<vmem>>, vector<32x32xf32>
    %c96_13 = arith.constant 96 : index
    %c32_14 = arith.constant 32 : index
    %20 = vector.load %arg3[%c96_13, %c32_14] : memref<296x33xf32, #tpu.memory_space<vmem>>, vector<32x1xf32>
    %cst_15 = arith.constant dense<0.000000e+00> : vector<32x128xf32>
    %21 = tpu.matmul %19, %18, %cst_15 {dimension_numbers = #tpu.dot_dimension_numbers<[1], [0], [0], [1], [0, 0, 1, 1], [], []>} : vector<32x32xf32>, vector<32x128xf32>, vector<32x128xf32> -> vector<32x128xf32>
    %22 = vector.broadcast %20 : vector<32x1xf32> to vector<32x128xf32>
    %23 = arith.addf %21, %22 : vector<32x128xf32>
    %24 = math.tanh %23 : vector<32x128xf32>
    %c128 = arith.constant 128 : index
    %c0_16 = arith.constant 0 : index
    %25 = vector.load %arg3[%c128, %c0_16] : memref<296x33xf32, #tpu.memory_space<vmem>>, vector<8x32xf32>
    %c128_17 = arith.constant 128 : index
    %c32_18 = arith.constant 32 : index
    %26 = vector.load %arg3[%c128_17, %c32_18] : memref<296x33xf32, #tpu.memory_space<vmem>>, vector<8x1xf32>
    %cst_19 = arith.constant dense<0.000000e+00> : vector<8x128xf32>
    %27 = tpu.matmul %25, %24, %cst_19 {dimension_numbers = #tpu.dot_dimension_numbers<[1], [0], [0], [1], [0, 0, 1, 1], [], []>} : vector<8x32xf32>, vector<32x128xf32>, vector<8x128xf32> -> vector<8x128xf32>
    %28 = vector.broadcast %26 : vector<8x1xf32> to vector<8x128xf32>
    %29 = arith.addf %27, %28 : vector<8x128xf32>
    %c136 = arith.constant 136 : index
    %c0_20 = arith.constant 0 : index
    %30 = vector.load %arg3[%c136, %c0_20] : memref<296x33xf32, #tpu.memory_space<vmem>>, vector<8x8xf32>
    %c136_21 = arith.constant 136 : index
    %c8 = arith.constant 8 : index
    %31 = vector.load %arg3[%c136_21, %c8] : memref<296x33xf32, #tpu.memory_space<vmem>>, vector<8x1xf32>
    %cst_22 = arith.constant dense<0.000000e+00> : vector<8x128xf32>
    %32 = tpu.matmul %30, %29, %cst_22 {dimension_numbers = #tpu.dot_dimension_numbers<[1], [0], [0], [1], [0, 0, 1, 1], [], []>} : vector<8x8xf32>, vector<8x128xf32>, vector<8x128xf32> -> vector<8x128xf32>
    %33 = vector.broadcast %31 : vector<8x1xf32> to vector<8x128xf32>
    %34 = arith.addf %32, %33 : vector<8x128xf32>
    %35 = math.tanh %34 : vector<8x128xf32>
    %c144 = arith.constant 144 : index
    %c0_23 = arith.constant 0 : index
    %36 = vector.load %arg3[%c144, %c0_23] : memref<296x33xf32, #tpu.memory_space<vmem>>, vector<8x8xf32>
    %c144_24 = arith.constant 144 : index
    %c8_25 = arith.constant 8 : index
    %37 = vector.load %arg3[%c144_24, %c8_25] : memref<296x33xf32, #tpu.memory_space<vmem>>, vector<8x1xf32>
    %cst_26 = arith.constant dense<0.000000e+00> : vector<8x128xf32>
    %38 = tpu.matmul %36, %35, %cst_26 {dimension_numbers = #tpu.dot_dimension_numbers<[1], [0], [0], [1], [0, 0, 1, 1], [], []>} : vector<8x8xf32>, vector<8x128xf32>, vector<8x128xf32> -> vector<8x128xf32>
    %39 = vector.broadcast %37 : vector<8x1xf32> to vector<8x128xf32>
    %40 = arith.addf %38, %39 : vector<8x128xf32>
    %c0_27 = arith.constant 0 : index
    %c0_28 = arith.constant 0 : index
    %41 = vector.load %arg2[%c0_27, %c0_28] : memref<8x128xf32, #tpu.memory_space<vmem>>, vector<8x128xf32>
    %cst_29 = arith.constant 5.000000e-01 : f32
    %42 = vector.broadcast %cst_29 : f32 to vector<8x128xf32>
    %43 = arith.mulf %42, %40 : vector<8x128xf32>
    %44 = math.exp %43 : vector<8x128xf32>
    %45 = arith.mulf %41, %44 : vector<8x128xf32>
    %46 = arith.addf %29, %45 : vector<8x128xf32>
    %c152 = arith.constant 152 : index
    %c0_30 = arith.constant 0 : index
    %47 = vector.load %arg3[%c152, %c0_30] : memref<296x33xf32, #tpu.memory_space<vmem>>, vector<32x8xf32>
    %c152_31 = arith.constant 152 : index
    %c8_32 = arith.constant 8 : index
    %48 = vector.load %arg3[%c152_31, %c8_32] : memref<296x33xf32, #tpu.memory_space<vmem>>, vector<32x1xf32>
    %cst_33 = arith.constant dense<0.000000e+00> : vector<32x128xf32>
    %49 = tpu.matmul %47, %46, %cst_33 {dimension_numbers = #tpu.dot_dimension_numbers<[1], [0], [0], [1], [0, 0, 1, 1], [], []>} : vector<32x8xf32>, vector<8x128xf32>, vector<32x128xf32> -> vector<32x128xf32>
    %50 = vector.broadcast %48 : vector<32x1xf32> to vector<32x128xf32>
    %51 = arith.addf %49, %50 : vector<32x128xf32>
    %52 = math.tanh %51 : vector<32x128xf32>
    %c184 = arith.constant 184 : index
    %c0_34 = arith.constant 0 : index
    %53 = vector.load %arg3[%c184, %c0_34] : memref<296x33xf32, #tpu.memory_space<vmem>>, vector<32x32xf32>
    %c184_35 = arith.constant 184 : index
    %c32_36 = arith.constant 32 : index
    %54 = vector.load %arg3[%c184_35, %c32_36] : memref<296x33xf32, #tpu.memory_space<vmem>>, vector<32x1xf32>
    %cst_37 = arith.constant dense<0.000000e+00> : vector<32x128xf32>
    %55 = tpu.matmul %53, %52, %cst_37 {dimension_numbers = #tpu.dot_dimension_numbers<[1], [0], [0], [1], [0, 0, 1, 1], [], []>} : vector<32x32xf32>, vector<32x128xf32>, vector<32x128xf32> -> vector<32x128xf32>
    %56 = vector.broadcast %54 : vector<32x1xf32> to vector<32x128xf32>
    %57 = arith.addf %55, %56 : vector<32x128xf32>
    %58 = math.tanh %57 : vector<32x128xf32>
    %c216 = arith.constant 216 : index
    %c0_38 = arith.constant 0 : index
    %59 = vector.load %arg3[%c216, %c0_38] : memref<296x33xf32, #tpu.memory_space<vmem>>, vector<32x32xf32>
    %c216_39 = arith.constant 216 : index
    %c32_40 = arith.constant 32 : index
    %60 = vector.load %arg3[%c216_39, %c32_40] : memref<296x33xf32, #tpu.memory_space<vmem>>, vector<32x1xf32>
    %cst_41 = arith.constant dense<0.000000e+00> : vector<32x128xf32>
    %61 = tpu.matmul %59, %58, %cst_41 {dimension_numbers = #tpu.dot_dimension_numbers<[1], [0], [0], [1], [0, 0, 1, 1], [], []>} : vector<32x32xf32>, vector<32x128xf32>, vector<32x128xf32> -> vector<32x128xf32>
    %62 = vector.broadcast %60 : vector<32x1xf32> to vector<32x128xf32>
    %63 = arith.addf %61, %62 : vector<32x128xf32>
    %64 = math.tanh %63 : vector<32x128xf32>
    %c248 = arith.constant 248 : index
    %c0_42 = arith.constant 0 : index
    %65 = vector.load %arg3[%c248, %c0_42] : memref<296x33xf32, #tpu.memory_space<vmem>>, vector<32x32xf32>
    %c248_43 = arith.constant 248 : index
    %c32_44 = arith.constant 32 : index
    %66 = vector.load %arg3[%c248_43, %c32_44] : memref<296x33xf32, #tpu.memory_space<vmem>>, vector<32x1xf32>
    %cst_45 = arith.constant dense<0.000000e+00> : vector<32x128xf32>
    %67 = tpu.matmul %65, %64, %cst_45 {dimension_numbers = #tpu.dot_dimension_numbers<[1], [0], [0], [1], [0, 0, 1, 1], [], []>} : vector<32x32xf32>, vector<32x128xf32>, vector<32x128xf32> -> vector<32x128xf32>
    %68 = vector.broadcast %66 : vector<32x1xf32> to vector<32x128xf32>
    %69 = arith.addf %67, %68 : vector<32x128xf32>
    %70 = math.tanh %69 : vector<32x128xf32>
    %c280 = arith.constant 280 : index
    %c0_46 = arith.constant 0 : index
    %71 = vector.load %arg3[%c280, %c0_46] : memref<296x33xf32, #tpu.memory_space<vmem>>, vector<16x32xf32>
    %c280_47 = arith.constant 280 : index
    %c32_48 = arith.constant 32 : index
    %72 = vector.load %arg3[%c280_47, %c32_48] : memref<296x33xf32, #tpu.memory_space<vmem>>, vector<16x1xf32>
    %cst_49 = arith.constant dense<0.000000e+00> : vector<16x128xf32>
    %73 = tpu.matmul %71, %70, %cst_49 {dimension_numbers = #tpu.dot_dimension_numbers<[1], [0], [0], [1], [0, 0, 1, 1], [], []>} : vector<16x32xf32>, vector<32x128xf32>, vector<16x128xf32> -> vector<16x128xf32>
    %74 = vector.broadcast %72 : vector<16x1xf32> to vector<16x128xf32>
    %75 = arith.addf %73, %74 : vector<16x128xf32>
    %76 = tpu.transpose %75, [1, 0] : vector<16x128xf32> -> vector<128x16xf32>
    %c0_50 = arith.constant 0 : index
    %c0_51 = arith.constant 0 : index
    %77 = vector.load %arg4[%c0_50, %c0_51] : memref<128x16xf32, #tpu.memory_space<vmem>>, vector<128x16xf32>
    tpu.vector_store %arg4[%c0_50, %c0_51], %76 {strides = array<i32>} : memref<128x16xf32, #tpu.memory_space<vmem>>, vector<128x16xf32>,
    %78 = tpu.transpose %29, [1, 0] : vector<8x128xf32> -> vector<128x8xf32>
    %c0_52 = arith.constant 0 : index
    %c0_53 = arith.constant 0 : index
    %79 = vector.load %arg5[%c0_52, %c0_53] : memref<128x8xf32, #tpu.memory_space<vmem>>, vector<128x8xf32>
    tpu.vector_store %arg5[%c0_52, %c0_53], %78 {strides = array<i32>} : memref<128x8xf32, #tpu.memory_space<vmem>>, vector<128x8xf32>,
    %80 = tpu.transpose %40, [1, 0] : vector<8x128xf32> -> vector<128x8xf32>
    %c0_54 = arith.constant 0 : index
    %c0_55 = arith.constant 0 : index
    %81 = vector.load %arg6[%c0_54, %c0_55] : memref<128x8xf32, #tpu.memory_space<vmem>>, vector<128x8xf32>
    tpu.vector_store %arg6[%c0_54, %c0_55], %80 {strides = array<i32>} : memref<128x8xf32, #tpu.memory_space<vmem>>, vector<128x8xf32>,
    return
  }
  func.func @transform_0(%arg0: i32) -> (i32, i32) {
    %c0_i32 = arith.constant 0 : i32
    %c0_i32_0 = arith.constant 0 : i32
    return %arg0, %c0_i32 : i32, i32
  }
  func.func @transform_1(%arg0: i32) -> (i32, i32) {
    %c0_i32 = arith.constant 0 : i32
    %c0_i32_0 = arith.constant 0 : i32
    return %c0_i32, %arg0 : i32, i32
  }
  func.func @transform_2(%arg0: i32) -> (i32, i32) {
    %c0_i32 = arith.constant 0 : i32
    %c0_i32_0 = arith.constant 0 : i32
    %c0_i32_1 = arith.constant 0 : i32
    return %c0_i32, %c0_i32_0 : i32, i32
  }
  func.func @transform_3(%arg0: i32) -> (i32, i32) {
    %c0_i32 = arith.constant 0 : i32
    %c0_i32_0 = arith.constant 0 : i32
    return %arg0, %c0_i32 : i32, i32
  }
  func.func @transform_4(%arg0: i32) -> (i32, i32) {
    %c0_i32 = arith.constant 0 : i32
    %c0_i32_0 = arith.constant 0 : i32
    return %arg0, %c0_i32 : i32, i32
  }
  func.func @transform_5(%arg0: i32) -> (i32, i32) {
    %c0_i32 = arith.constant 0 : i32
    %c0_i32_0 = arith.constant 0 : i32
    return %arg0, %c0_i32 : i32, i32
  }
}

</mosaic_0001>

<bundles_post_ra>
// kernel: tpu_custom_call.1
= control target key start
LH: loop header
LB: loop body
LE: loop exit
PB: predicated region body
PF: predicated region fallthrough
CT: control target
= control target key end

     0   :  { %vm57_vm0 = vcmask 130048   ;;  %v1924_v2 = vmov 16   ;;  %vm227_vm1 = vcmask 261120   ;;  %v1925_v24 = vmov 32   ;;  %s2494_s0 = inlined_call_operand.vmem [shape: f32[128,16], index: 0, kind: input, shape index: {}]   ;;  %s2495_s2 = inlined_call_operand.vmem [shape: f32[296,33], index: 2, kind: input, shape index: {}]   ;;  %s2496_s1 = inlined_call_operand.vmem [shape: f32[8,128], index: 1, kind: input, shape index: {}]   ;;  %s2497_s4 = inlined_call_operand.vmem [shape: f32[128,8], index: 4, kind: output, shape index: {1}]   ;;  %s2498_s3 = inlined_call_operand.vmem [shape: f32[128,16], index: 3, kind: output, shape index: {0}]   ;;  %s2499_s5 = inlined_call_operand.vmem [shape: f32[128,8], index: 5, kind: output, shape index: {2}]  }
   0x1   :  { %v36_v0 = vld [vmem:[%s2494_s0 + $0x78] sm:$0xff]  ;;  %v35_v1 = vld [vmem:[%s2494_s0 + $0x70] sm:$0xff]  ;;  %1849 = vset.pattern.permute.xlu1 %v1924_v2  ;;  %1848 = vset.pattern.permute.xlu0 %v1924_v2  ;;  %v34_v3 = vld [vmem:[%s2494_s0 + $0x68] sm:$0xff]  ;;  %vm1927_vm2 = vmmov 0   ;;  %vm651_vm3 = vcmask 64512  }
   0x2   :  { %1681 = vmatprep.subr.msk.mxu0 %vm57_vm0, %v36_v0  ;;  %v17_v4 = vld [vmem:[%s2495_s2] sm:$0xff]  ;;  %v20_v5 = vld [vmem:[%s2495_s2 + $0x18] sm:$0xff]  ;;  %v18_v6 = vld [vmem:[%s2495_s2 + $0x8] sm:$0xff] }
   0x3   :  { %1682 = vmatpush3.xpose.msk.msra.mxu0 %vm57_vm0, %v36_v0  ;;  %1713 = vmatprep.mubr.msk.f32.mxu0 %vm57_vm0, %v17_v4  ;;  %v33_v7 = vld [vmem:[%s2494_s0 + $0x60] sm:$0xff]  ;;  %v19_v8 = vld [vmem:[%s2495_s2 + $0x10] sm:$0xff]  ;;  %v32_v9 = vld [vmem:[%s2494_s0 + $0x58] sm:$0xff] }
   0x4   :  { %1683 = vmatprep.subr.msk.mxu0 %vm57_vm0, %v35_v1  ;;  %54 = vperm.xlu0 %1848, %v20_v5   ;;  %v31_v10 = vld [vmem:[%s2494_s0 + $0x50] sm:$0xff]  ;;  %v30_v11 = vld [vmem:[%s2494_s0 + $0x48] sm:$0xff]  ;;  %v29_v12 = vld [vmem:[%s2494_s0 + $0x40] sm:$0xff] }
   0x5   :  { %44 = vperm.xlu1 %1849, %v18_v6   ;;  %v28_v13 = vld [vmem:[%s2494_s0 + $0x38] sm:$0xff]  ;;  %v27_v14 = vld [vmem:[%s2494_s0 + $0x30] sm:$0xff]  ;;  %v26_v15 = vld [vmem:[%s2494_s0 + $0x28] sm:$0xff] }
   0x6   :  { %v25_v16 = vld [vmem:[%s2494_s0 + $0x20] sm:$0xff]  ;;  %v24_v17 = vld [vmem:[%s2494_s0 + $0x18] sm:$0xff]  ;;  %v23_v18 = vld [vmem:[%s2494_s0 + $0x10] sm:$0xff] }
   0x7   :  { %1684 = vmatpush3.xpose.msk.msra.mxu0 %vm57_vm0, %v35_v1  ;;  %v22_v19 = vld [vmem:[%s2494_s0 + $0x8] sm:$0xff]  ;;  %v21_v20 = vld [vmem:[%s2494_s0] sm:$0xff]  ;;  %v205_v22 = vld [vmem:[%s2495_s2 + $0x30] sm:$0xff] }
   0x8   :  { %1685 = vmatprep.subr.msk.mxu0 %vm57_vm0, %v34_v3  ;;  %49 = vperm.xlu0 %1848, %v19_v8   ;;  %v203_v21 = vld [vmem:[%s2495_s2 + $0x20] sm:$0xff]  ;;  %v206_v23 = vld [vmem:[%s2495_s2 + $0x38] sm:$0xff]  ;;  %v204_v25 = vld [vmem:[%s2495_s2 + $0x28] sm:$0xff] }
   0x9   :  { %39 = vperm.xlu1 %1849, %v17_v4   ;;  %1727 = vmatprep.mubr.msk.f32.mxu1 %vm227_vm1, %v203_v21  ;;  %v2073_v26 = vld [vmem:[%s2495_s2 + $0x58] sm:$0xff]  ;;  %v2078_v27 = vld [vmem:[%s2495_s2 + $0x50] sm:$0xff]  ;;  %v2085_v28 = vld [vmem:[%s2495_s2 + $0x48] sm:$0xff] }
   0xa   :  { %v325_v29 = vld [vmem:[%s2495_s2 + $0x40] sm:$0xff]  ;;  %v2094_v30 = vld [vmem:[%s2495_s2 + $0x78] sm:$0xff]  ;;  %v2099_v31 = vld [vmem:[%s2495_s2 + $0x70] sm:$0xff] }
   0xb   :  { %1686 = vmatpush3.xpose.msk.msra.mxu0 %vm57_vm0, %v34_v3  ;;  %v2106_v32 = vld [vmem:[%s2495_s2 + $0x68] sm:$0xff]  ;;  %v2111_v33 = vld [vmem:[%s2495_s2 + $0x60] sm:$0xff] }
   0xc   :  { %1687 = vmatprep.subr.msk.mxu0 %vm57_vm0, %v33_v7  ;;  %1850 = vset.pattern.permute.xlu0 %v1925_v24  ;;  %v2118_v34 = vld [vmem:[%s2495_s2 + $0x80] sm:$0xff] }
   0xd   :  { %1851 = vset.pattern.permute.xlu1 %v1925_v24  ;;  %224 = vperm.xlu0 %1850, %v206_v23  }
   0xe   :  { %219 = vperm.xlu1 %1851, %v205_v22  }
   0xf   :  { %1688 = vmatpush3.xpose.msk.msra.mxu0 %vm57_vm0, %v33_v7 }
  0x10   :  { %1689 = vmatprep.subr.msk.mxu0 %vm57_vm0, %v32_v9 }
  0x11   :  { %209 = vperm.xlu0 %1850, %v203_v21   ;;  %v1928_v21 = vmov 8  }
  0x12   :  { %214 = vperm.xlu1 %1851, %v204_v25  }
  0x13   :  { %1690 = vmatpush3.xpose.msk.msra.mxu0 %vm57_vm0, %v32_v9 }
  0x14   :  { %1691 = vmatprep.subr.msk.mxu0 %vm57_vm0, %v31_v10 }
  0x15   :  { %341 = vperm.xlu0 %1850, %v2078_v27  }
  0x16   :  { %346 = vperm.xlu1 %1851, %v2073_v26  }
  0x17   :  { %1692 = vmatpush3.xpose.msk.msra.mxu0 %vm57_vm0, %v31_v10 }
  0x18   :  { %1693 = vmatprep.subr.msk.mxu0 %vm57_vm0, %v30_v11 }
  0x19   :  { %331 = vperm.xlu0 %1850, %v325_v29  }
  0x1a   :  { %336 = vperm.xlu1 %1851, %v2085_v28  }
  0x1b   :  { %1694 = vmatpush3.xpose.msk.msra.mxu0 %vm57_vm0, %v30_v11 }
  0x1c   :  { %1695 = vmatprep.subr.msk.mxu0 %vm57_vm0, %v29_v12 }
  0x1d   :  { %462 = vperm.xlu0 %1850, %v2099_v31  }
  0x1e   :  { %467 = vperm.xlu1 %1851, %v2094_v30  }
  0x1f   :  { %1696 = vmatpush3.xpose.msk.msra.mxu0 %vm57_vm0, %v29_v12 }
  0x20   :  { %1697 = vmatprep.subr.msk.mxu0 %vm57_vm0, %v28_v13 }
  0x21   :  { %452 = vperm.xlu0 %1850, %v2111_v33  }
  0x22   :  { %457 = vperm.xlu1 %1851, %v2106_v32  }
  0x23   :  { %1698 = vmatpush3.xpose.msk.msra.mxu0 %vm57_vm0, %v28_v13 }
  0x24   :  { %1699 = vmatprep.subr.msk.mxu0 %vm57_vm0, %v27_v14 }
  0x25   :  { %1852 = vset.pattern.permute.xlu0 %v1928_v21 }
  0x26   :  { %570 = vperm.xlu1 %1851, %v2118_v34  }
  0x27   :  { %1700 = vmatpush3.xpose.msk.msra.mxu0 %vm57_vm0, %v27_v14 }
  0x28   :  { %1701 = vmatprep.subr.msk.mxu0 %vm57_vm0, %v26_v15 }
  0x2a   :  { %1853 = vset.pattern.permute.xlu1 %v1928_v21 }
  0x2b   :  { %1702 = vmatpush3.xpose.msk.msra.mxu0 %vm57_vm0, %v26_v15 }
  0x2c   :  { %1703 = vmatprep.subr.msk.mxu0 %vm57_vm0, %v25_v16 }
  0x2f   :  { %1704 = vmatpush3.xpose.msk.msra.mxu0 %vm57_vm0, %v25_v16 }
  0x30   :  { %1705 = vmatprep.subr.msk.mxu0 %vm57_vm0, %v24_v17 }
  0x33   :  { %1706 = vmatpush3.xpose.msk.msra.mxu0 %vm57_vm0, %v24_v17 }
  0x34   :  { %1707 = vmatprep.subr.msk.mxu0 %vm57_vm0, %v23_v18 }
  0x37   :  { %1708 = vmatpush3.xpose.msk.msra.mxu0 %vm57_vm0, %v23_v18 }
  0x38   :  { %1709 = vmatprep.subr.msk.mxu0 %vm57_vm0, %v22_v19 }
  0x3b   :  { %1710 = vmatpush3.xpose.msk.msra.mxu0 %vm57_vm0, %v22_v19  ;;  %v1926_v19 = vmov 0.0  }
  0x3c   :  { %1711 = vmatprep.subr.msk.mxu0 %vm57_vm0, %v21_v20 }
  0x3f   :  { %1712 = vmatpush3.xpose.msk.msra.mxu0 %vm57_vm0, %v21_v20  ;;  %v2145_v20 = vld [vmem:[%s2495_s2 + $0x90] sm:$0xff] }
  0x40   :  { %728 = vperm.xlu1 %1853, %v2145_v20  }
  0x42   :  { %1714 = vmatmul.mubr.msk.f32.vlgmr.msra.gmra.mxu0 %vm57_vm0, %v18_v6 }
  0x43   :  { %1716 = vmatprep.mubr.msk.f32.mxu0 %vm57_vm0, %v19_v8 }
  0x46   :  { %1717 = vmatmul.mubr.msk.f32.gmra.mxu0 %vm57_vm0, %v20_v5 }
  0x7f   :  { %v55_v35 = vpop.permute.xlu0 %54 }
  0x80   :  { %v45_v36 = vpop.permute.xlu1 %44 }
  0x83   :  { %v50_v40 = vpop.permute.xlu0 %49 }
  0x84   :  { %v40_v42 = vpop.permute.xlu1 %39 }
  0x88   :  { %v225_v53 = vpop.permute.xlu0 %224 }
  0x89   :  { %v220_v51 = vpop.permute.xlu1 %219 }
  0x8c   :  { %v210_v61 = vpop.permute.xlu0 %209 }
  0x8d   :  { %v215_v57 = vpop.permute.xlu1 %214 }
  0x90   :  { %v342_v5 = vpop.permute.xlu0 %341 }
  0x91   :  { %v347_v3 = vpop.permute.xlu1 %346 }
  0x94   :  { %v332_v13 = vpop.permute.xlu0 %331 }
  0x95   :  { %v337_v9 = vpop.permute.xlu1 %336 }
 0x102   :  { %v1715_v37 = vpop.f32.mrf.mxu0 }
 0x103   :  { %v186_v44 = vadd.f32 %v1715_v37, %v45_v36  ;;  %v463_v36 = vpop.permute.xlu0 %462 }
 0x104   :  { %v180_v38 = vpop.f32.mrf.mxu0 }
 0x105   :  { %v181_v46 = vadd.f32 %v180_v38, %v40_v42 }
 0x106   :  { %v1718_v39 = vpop.f32.mrf.mxu0 }
 0x107   :  { %v196_v41 = vadd.f32 %v1718_v39, %v55_v35 }
 0x108   :  { %v190_v43 = vpop.f32.mrf.mxu0 }
 0x109   :  { %1856 = vtanh.f32 %v196_v41  ;;  %v191_v45 = vadd.f32 %v190_v43, %v50_v40 }
 0x10b   :  { %1858 = vtanh.f32 %v191_v45 }
 0x10c   :  { %1860 = vtanh.f32 %v186_v44  ;;  %v453_v44 = vpop.permute.xlu0 %452 }
 0x10d   :  { %1862 = vtanh.f32 %v181_v46 }
 0x116   :  { %v1857_v47 = vpop.eup %1856 }
 0x117   :  { %1719 = vmatprep.subr.mxu1 %v1857_v47 }
 0x118   :  { %v1859_v48 = vpop.eup %1858  ;;  %1720 = vmatpush3.msra.mxu1 %v1857_v47 }
 0x119   :  { %1721 = vmatprep.subr.mxu1 %v1859_v48  ;;  %v1861_v49 = vpop.eup %1860 }
 0x11a   :  { %1722 = vmatpush3.msra.mxu1 %v1859_v48  ;;  %v1863_v50 = vpop.eup %1862 }
 0x11b   :  { %1723 = vmatprep.subr.mxu1 %v1861_v49 }
 0x11c   :  { %1724 = vmatpush3.msra.mxu1 %v1861_v49 }
 0x11d   :  { %1725 = vmatprep.subr.mxu1 %v1863_v50 }
 0x11e   :  { %1726 = vmatpush3.msra.mxu1 %v1863_v50  ;;  %v645_v50 = vld [vmem:[%s2495_s2 + $0x88] sm:$0xff] }
 0x11f   :  { %1728 = vmatmul.mubr.msk.f32.vlgmr.msra.gmra.mxu1 %vm227_vm1, %v204_v25  ;;  %v2163_v25 = vld [vmem:[%s2495_s2 + $0xd0] sm:$0xff]  ;;  %648 = vperm.xlu0 %1852, %v645_v50  }
 0x120   :  { %1730 = vmatprep.mubr.msk.f32.mxu1 %vm227_vm1, %v205_v22  ;;  %v2151_v22 = vld [vmem:[%s2495_s2 + $0xb0] sm:$0xff] }
 0x121   :  { %830 = vperm.xlu1 %1853, %v2151_v22  }
 0x123   :  { %1731 = vmatmul.mubr.msk.f32.gmra.mxu1 %vm227_vm1, %v206_v23  ;;  %v2157_v23 = vld [vmem:[%s2495_s2 + $0xa0] sm:$0xff] }
 0x124   :  { %1741 = vmatprep.mubr.msk.f32.mxu1 %vm227_vm1, %v325_v29  ;;  %v2188_v29 = vld [vmem:[%s2495_s2 + $0xd8] sm:$0xff] }
 0x125   :  { %820 = vperm.xlu1 %1853, %v2157_v23  }
 0x129   :  { %1854 = vset.pattern.permute.xlu1 %v1925_v24 }
 0x12a   :  { %951 = vperm.xlu1 %1854, %v2163_v25  }
 0x1df   :  { %v1729_v52 = vpop.f32.mrf.mxu1 }
 0x1e0   :  { %v308_v59 = vadd.f32 %v1729_v52, %v215_v57  ;;  %v809_v52 = vld [vmem:[%s2495_s2 + $0x98] sm:$0xff] }
 0x1e1   :  { %v302_v54 = vpop.f32.mrf.mxu1 }
 0x1e2   :  { %v303_v62 = vadd.f32 %v302_v54, %v210_v61 }
 0x1e3   :  { %v1732_v55 = vpop.f32.mrf.mxu1 }
 0x1e4   :  { %v318_v56 = vadd.f32 %v1732_v55, %v225_v53 }
 0x1e5   :  { %v312_v58 = vpop.f32.mrf.mxu1 }
 0x1e6   :  { %1864 = vtanh.f32 %v318_v56  ;;  %v313_v60 = vadd.f32 %v312_v58, %v220_v51  ;;  %v811_v51 = vld [vmem:[%s2495_s2 + $0xa8] sm:$0xff]  ;;  %v649_v56 = vpop.permute.xlu0 %648 }
 0x1e7   :  { %825 = vperm.xlu0 %1852, %v811_v51  }
 0x1e8   :  { %1866 = vtanh.f32 %v313_v60 }
 0x1e9   :  { %1868 = vtanh.f32 %v308_v59 }
 0x1ea   :  { %1870 = vtanh.f32 %v303_v62 }
 0x1eb   :  { %815 = vperm.xlu0 %1852, %v809_v52  }
 0x1ef   :  { %1855 = vset.pattern.permute.xlu0 %v1925_v24 }
 0x1f3   :  { %v1865_v63 = vpop.eup %1864 }
 0x1f4   :  { %1733 = vmatprep.subr.mxu1 %v1865_v63 }
 0x1f5   :  { %v1867_v0 = vpop.eup %1866  ;;  %1734 = vmatpush3.msra.mxu1 %v1865_v63 }
 0x1f6   :  { %1735 = vmatprep.subr.mxu1 %v1867_v0  ;;  %v1869_v1 = vpop.eup %1868 }
 0x1f7   :  { %1736 = vmatpush3.msra.mxu1 %v1867_v0  ;;  %v1871_v2 = vpop.eup %1870 }
 0x1f8   :  { %1737 = vmatprep.subr.mxu1 %v1869_v1 }
 0x1f9   :  { %1738 = vmatpush3.msra.mxu1 %v1869_v1 }
 0x1fa   :  { %1739 = vmatprep.subr.mxu1 %v1871_v2 }
 0x1fb   :  { %1740 = vmatpush3.msra.mxu1 %v1871_v2  ;;  %v803_v2 = vld [vmem:[%s2496_s1] sm:$0xff] }
 0x1fc   :  { %1742 = vmatmul.mubr.msk.f32.vlgmr.msra.gmra.mxu1 %vm227_vm1, %v2085_v28  ;;  %v2182_v28 = vld [vmem:[%s2495_s2 + $0xe8] sm:$0xff] }
 0x1fd   :  { %1744 = vmatprep.mubr.msk.f32.mxu1 %vm227_vm1, %v2078_v27  ;;  %v2176_v27 = vld [vmem:[%s2495_s2 + $0xb8] sm:$0xff] }
 0x200   :  { %1745 = vmatmul.mubr.msk.f32.gmra.mxu1 %vm227_vm1, %v2073_v26  ;;  %v2170_v26 = vld [vmem:[%s2495_s2 + $0xc0] sm:$0xff] }
 0x201   :  { %1755 = vmatprep.mubr.msk.f32.mxu1 %vm227_vm1, %v2111_v33  ;;  %941 = vperm.xlu1 %1854, %v2170_v26   ;;  %v468_v33 = vpop.permute.xlu1 %467 }
 0x205   :  { %936 = vperm.xlu1 %1854, %v2176_v27   ;;  %v458_v40 = vpop.permute.xlu1 %457 }
 0x209   :  { %1067 = vperm.xlu1 %1854, %v2182_v28  }
 0x20d   :  { %1057 = vperm.xlu1 %1854, %v2188_v29  }
 0x2bc   :  { %v1743_v4 = vpop.f32.mrf.mxu1 }
 0x2bd   :  { %v429_v11 = vadd.f32 %v1743_v4, %v337_v9  ;;  %v2262_v9 = vld [vmem:[%s2495_s2 + $0xe0] sm:$0xff] }
 0x2be   :  { %v423_v6 = vpop.f32.mrf.mxu1 }
 0x2bf   :  { %v424_v14 = vadd.f32 %v423_v6, %v332_v13  ;;  %v932_v6 = vld [vmem:[%s2495_s2 + $0xc8] sm:$0xff] }
 0x2c0   :  { %v1746_v7 = vpop.f32.mrf.mxu1  ;;  %946 = vperm.xlu0 %1855, %v932_v6  }
 0x2c1   :  { %v439_v8 = vadd.f32 %v1746_v7, %v347_v3  ;;  %v2253_v7 = vld [vmem:[%s2495_s2 + $0xf0] sm:$0xff] }
 0x2c2   :  { %v433_v10 = vpop.f32.mrf.mxu1 }
 0x2c3   :  { %1872 = vtanh.f32 %v439_v8  ;;  %v434_v12 = vadd.f32 %v433_v10, %v342_v5  ;;  %v1293_v8 = vld [vmem:[%s2495_s2 + $0x118] sm:$0xff]  ;;  %v2269_v10 = vld [vmem:[%s2495_s2 + $0x110] sm:$0xff] }
 0x2c4   :  { %1072 = vperm.xlu0 %1855, %v2253_v7   ;;  %1840 = vmatprep.mubr.msk.f32.mxu0 %vm227_vm1, %v1293_v8 }
 0x2c5   :  { %1874 = vtanh.f32 %v434_v12 }
 0x2c6   :  { %1876 = vtanh.f32 %v429_v11  ;;  %v2275_v11 = vld [vmem:[%s2495_s2 + $0x100] sm:$0xff] }
 0x2c7   :  { %1878 = vtanh.f32 %v424_v14  ;;  %v826_v14 = vpop.permute.xlu0 %825 }
 0x2c8   :  { %1062 = vperm.xlu0 %1855, %v2262_v9  }
 0x2cc   :  { %1193 = vperm.xlu0 %1855, %v2269_v10  }
 0x2d0   :  { %v1873_v15 = vpop.eup %1872  ;;  %1183 = vperm.xlu0 %1855, %v2275_v11  }
 0x2d1   :  { %1747 = vmatprep.subr.mxu1 %v1873_v15 }
 0x2d2   :  { %v1875_v16 = vpop.eup %1874  ;;  %1748 = vmatpush3.msra.mxu1 %v1873_v15 }
 0x2d3   :  { %1749 = vmatprep.subr.mxu1 %v1875_v16  ;;  %v1877_v17 = vpop.eup %1876 }
 0x2d4   :  { %1750 = vmatpush3.msra.mxu1 %v1875_v16  ;;  %v1879_v18 = vpop.eup %1878  ;;  %1297 = vperm.xlu0 %1855, %v1293_v8  }
 0x2d5   :  { %1751 = vmatprep.subr.mxu1 %v1877_v17 }
 0x2d6   :  { %1752 = vmatpush3.msra.mxu1 %v1877_v17 }
 0x2d7   :  { %1753 = vmatprep.subr.mxu1 %v1879_v18 }
 0x2d8   :  { %1754 = vmatpush3.msra.mxu1 %v1879_v18 }
 0x2d9   :  { %1756 = vmatmul.mubr.msk.f32.vlgmr.msra.gmra.mxu1 %vm227_vm1, %v2106_v32  ;;  %1761 = vmatprep.subr.mxu1 %v1926_v19  ;;  %v2206_v32 = vld [vmem:[%s2495_s2 + $0x120] sm:$0xff] }
 0x2da   :  { %1758 = vmatprep.mubr.msk.f32.mxu1 %vm227_vm1, %v2099_v31  ;;  %v2200_v31 = vld [vmem:[%s2495_s2 + $0xf8] sm:$0xff] }
 0x2dd   :  { %1759 = vmatmul.mubr.msk.f32.gmra.mxu1 %vm227_vm1, %v2094_v30  ;;  %v2194_v30 = vld [vmem:[%s2495_s2 + $0x108] sm:$0xff] }
 0x2de   :  { %1769 = vmatprep.mubr.msk.f32.mxu1 %vm1927_vm2, %v1926_v19  ;;  %1188 = vperm.xlu1 %1854, %v2194_v30  }
 0x2e2   :  { %1178 = vperm.xlu1 %1854, %v2200_v31  }
 0x2e6   :  { %1302 = vperm.xlu1 %1854, %v2206_v32  }
 0x399   :  { %v1757_v35 = vpop.f32.mrf.mxu1 }
 0x39a   :  { %v550_v42 = vadd.f32 %v1757_v35, %v458_v40 }
 0x39b   :  { %v544_v37 = vpop.f32.mrf.mxu1 }
 0x39c   :  { %v545_v45 = vadd.f32 %v544_v37, %v453_v44 }
 0x39d   :  { %v1760_v38 = vpop.f32.mrf.mxu1 }
 0x39e   :  { %v560_v39 = vadd.f32 %v1760_v38, %v468_v33 }
 0x39f   :  { %v554_v41 = vpop.f32.mrf.mxu1 }
 0x3a0   :  { %1880 = vtanh.f32 %v560_v39  ;;  %v555_v43 = vadd.f32 %v554_v41, %v463_v36 }
 0x3a2   :  { %1882 = vtanh.f32 %v555_v43 }
 0x3a3   :  { %1884 = vtanh.f32 %v550_v42 }
 0x3a4   :  { %1886 = vtanh.f32 %v545_v45 }
 0x3ad   :  { %v1881_v46 = vpop.eup %1880 }
 0x3ae   :  { %1762 = vmatpush3.msra.mxu1 %v1881_v46 }
 0x3af   :  { %v1883_v47 = vpop.eup %1882  ;;  %1763 = vmatprep.subr.mxu1 %v1926_v19 }
 0x3b0   :  { %1764 = vmatpush3.msra.mxu1 %v1883_v47  ;;  %v1885_v48 = vpop.eup %1884 }
 0x3b1   :  { %1765 = vmatprep.subr.mxu1 %v1926_v19  ;;  %v1887_v49 = vpop.eup %1886 }
 0x3b2   :  { %1766 = vmatpush3.msra.mxu1 %v1885_v48 }
 0x3b3   :  { %1767 = vmatprep.subr.mxu1 %v1926_v19 }
 0x3b4   :  { %1768 = vmatpush3.msra.mxu1 %v1887_v49 }
 0x3b5   :  { %1770 = vmatmul.mubr.msk.f32.vlgmr.msra.gmra.mxu1 %vm227_vm1, %v2118_v34  ;;  %1772 = vmatprep.subr.mxu1 %v1926_v19  ;;  %v571_v34 = vpop.permute.xlu1 %570 }
 0x3b6   :  { %1774 = vmatprep.mubr.msk.f32.mxu1 %vm1927_vm2, %v1926_v19 }
 0x3b9   :  { %v729_v60 = vpop.permute.xlu1 %728 }
 0x3bd   :  { %v831_v12 = vpop.permute.xlu1 %830 }
 0x3c1   :  { %v821_v18 = vpop.permute.xlu1 %820 }
 0x3c5   :  { %v952_v37 = vpop.permute.xlu1 %951 }
 0x3c9   :  { %v942_v39 = vpop.permute.xlu1 %941 }
 0x475   :  { %v641_v53 = vpop.f32.mrf.mxu1 }
 0x476   :  { %v642_v54 = vadd.f32 %v641_v53, %v571_v34 }
 0x477   :  { %v1771_v55 = vpop.f32.mrf.mxu1 }
 0x478   :  { %1432 = vxpose.xlu1.b32.start.end [1/1] (short) %v642_v54, 128  ;;  %1773 = vmatpush3.msra.mxu1 %v642_v54 }
 0x479   :  { %1775 = vmatmul.mubr.msk.f32.vlgmr.msra.gmra.mxu1 %vm651_vm3, %v645_v50  ;;  %1777 = vmatprep.subr.mxu1 %v1926_v19 }
 0x47a   :  { %1779 = vmatprep.mubr.msk.f32.mxu1 %vm1927_vm2, %v1926_v19 }
 0x539   :  { %v720_v57 = vpop.f32.mrf.mxu1 }
 0x53a   :  { %v721_v58 = vadd.f32 %v720_v57, %v649_v56 }
 0x53b   :  { %v1776_v59 = vpop.f32.mrf.mxu1 }
 0x53c   :  { %1888 = vtanh.f32 %v721_v58 }
 0x549   :  { %v1889_v24 = vpop.eup %1888 }
 0x54a   :  { %1778 = vmatpush3.msra.mxu1 %v1889_v24 }
 0x54b   :  { %1780 = vmatmul.mubr.msk.f32.vlgmr.msra.gmra.mxu1 %vm651_vm3, %v2145_v20 }
 0x54c   :  { %1784 = vmatprep.mubr.msk.f32.mxu1 %vm651_vm3, %v809_v52 }
 0x60b   :  { %v799_v61 = vpop.f32.mrf.mxu1 }
 0x60c   :  { %v2234_v62 = vadd.f32 %v799_v61, %v729_v60 }
 0x60d   :  { %v1781_v63 = vpop.f32.mrf.mxu1 }
 0x60e   :  { %v804_v0 = vmul.f32 0.5, %v2234_v62 }
 0x610   :  { %v805_v1 = vmul.f32 1.442695, %v804_v0 }
 0x612   :  { %1890 = vpow2.f32 %v805_v1 }
 0x61f   :  { %v1891_v3 = vpop.eup %1890 }
 0x620   :  { %v807_v4 = vmul.f32 %v1891_v3, %v803_v2 }
 0x622   :  { %v808_v5 = vadd.f32 %v807_v4, %v642_v54 }
 0x624   :  { %1782 = vmatprep.subr.mxu1 %v808_v5 }
 0x625   :  { %1783 = vmatpush3.msra.mxu1 %v808_v5 }
 0x626   :  { %1785 = vmatmul.mubr.msk.f32.vlgmr.msra.gmra.mxu1 %vm651_vm3, %v2157_v23 }
 0x627   :  { %1787 = vmatprep.mubr.msk.f32.mxu1 %vm651_vm3, %v811_v51 }
 0x62a   :  { %1788 = vmatmul.mubr.msk.f32.gmra.mxu1 %vm651_vm3, %v2151_v22  ;;  %v816_v22 = vpop.permute.xlu0 %815 }
 0x62b   :  { %1798 = vmatprep.mubr.msk.f32.mxu1 %vm227_vm1, %v2176_v27 }
 0x62e   :  { %v947_v43 = vpop.permute.xlu0 %946 }
 0x632   :  { %v1073_v50 = vpop.permute.xlu0 %1072 }
 0x636   :  { %v1063_v55 = vpop.permute.xlu0 %1062 }
 0x63a   :  { %v1194_v63 = vpop.permute.xlu0 %1193 }
 0x63e   :  { %v1184_v5 = vpop.permute.xlu0 %1183 }
 0x6e6   :  { %v1786_v13 = vpop.f32.mrf.mxu1 }
 0x6e7   :  { %v913_v20 = vadd.f32 %v1786_v13, %v821_v18 }
 0x6e8   :  { %v907_v15 = vpop.f32.mrf.mxu1 }
 0x6e9   :  { %v908_v23 = vadd.f32 %v907_v15, %v816_v22  ;;  %v1298_v15 = vpop.permute.xlu0 %1297 }
 0x6ea   :  { %v1789_v16 = vpop.f32.mrf.mxu1 }
 0x6eb   :  { %v923_v17 = vadd.f32 %v1789_v16, %v831_v12 }
 0x6ec   :  { %v917_v19 = vpop.f32.mrf.mxu1 }
 0x6ed   :  { %1892 = vtanh.f32 %v923_v17  ;;  %v918_v21 = vadd.f32 %v917_v19, %v826_v14 }
 0x6ef   :  { %1894 = vtanh.f32 %v918_v21 }
 0x6f0   :  { %1896 = vtanh.f32 %v913_v20 }
 0x6f1   :  { %1898 = vtanh.f32 %v908_v23 }
 0x6fa   :  { %v1893_v27 = vpop.eup %1892 }
 0x6fb   :  { %1790 = vmatprep.subr.mxu1 %v1893_v27 }
 0x6fc   :  { %v1895_v33 = vpop.eup %1894  ;;  %1791 = vmatpush3.msra.mxu1 %v1893_v27 }
 0x6fd   :  { %1792 = vmatprep.subr.mxu1 %v1895_v33  ;;  %v1897_v35 = vpop.eup %1896 }
 0x6fe   :  { %1793 = vmatpush3.msra.mxu1 %v1895_v33  ;;  %v1899_v36 = vpop.eup %1898 }
 0x6ff   :  { %1794 = vmatprep.subr.mxu1 %v1897_v35 }
 0x700   :  { %1795 = vmatpush3.msra.mxu1 %v1897_v35 }
 0x701   :  { %1796 = vmatprep.subr.mxu1 %v1899_v36 }
 0x702   :  { %1797 = vmatpush3.msra.mxu1 %v1899_v36 }
 0x703   :  { %1799 = vmatmul.mubr.msk.f32.vlgmr.msra.gmra.mxu1 %vm227_vm1, %v2170_v26  ;;  %v937_v26 = vpop.permute.xlu1 %936 }
 0x704   :  { %1801 = vmatprep.mubr.msk.f32.mxu1 %vm227_vm1, %v932_v6 }
 0x707   :  { %1802 = vmatmul.mubr.msk.f32.gmra.mxu1 %vm227_vm1, %v2163_v25  ;;  %v1068_v52 = vpop.permute.xlu1 %1067 }
 0x708   :  { %1812 = vmatprep.mubr.msk.f32.mxu1 %vm227_vm1, %v2188_v29 }
 0x70b   :  { %v1058_v59 = vpop.permute.xlu1 %1057 }
 0x70f   :  { %v1189_v1 = vpop.permute.xlu1 %1188 }
 0x7c3   :  { %v1800_v38 = vpop.f32.mrf.mxu1 }
 0x7c4   :  { %v1034_v45 = vadd.f32 %v1800_v38, %v942_v39 }
 0x7c5   :  { %v1028_v40 = vpop.f32.mrf.mxu1 }
 0x7c6   :  { %v1029_v47 = vadd.f32 %v1028_v40, %v937_v26 }
 0x7c7   :  { %v1803_v41 = vpop.f32.mrf.mxu1 }
 0x7c8   :  { %v1044_v42 = vadd.f32 %v1803_v41, %v952_v37 }
 0x7c9   :  { %v1038_v44 = vpop.f32.mrf.mxu1 }
 0x7ca   :  { %1900 = vtanh.f32 %v1044_v42  ;;  %v1039_v46 = vadd.f32 %v1038_v44, %v947_v43 }
 0x7cc   :  { %1902 = vtanh.f32 %v1039_v46 }
 0x7cd   :  { %1904 = vtanh.f32 %v1034_v45 }
 0x7ce   :  { %1906 = vtanh.f32 %v1029_v47 }
 0x7d7   :  { %v1901_v25 = vpop.eup %1900 }
 0x7d8   :  { %1804 = vmatprep.subr.mxu1 %v1901_v25 }
 0x7d9   :  { %v1903_v48 = vpop.eup %1902  ;;  %1805 = vmatpush3.msra.mxu1 %v1901_v25 }
 0x7da   :  { %1806 = vmatprep.subr.mxu1 %v1903_v48  ;;  %v1905_v29 = vpop.eup %1904 }
 0x7db   :  { %1807 = vmatpush3.msra.mxu1 %v1903_v48  ;;  %v1907_v49 = vpop.eup %1906 }
 0x7dc   :  { %1808 = vmatprep.subr.mxu1 %v1905_v29 }
 0x7dd   :  { %1809 = vmatpush3.msra.mxu1 %v1905_v29 }
 0x7de   :  { %1810 = vmatprep.subr.mxu1 %v1907_v49 }
 0x7df   :  { %1811 = vmatpush3.msra.mxu1 %v1907_v49 }
 0x7e0   :  { %1813 = vmatmul.mubr.msk.f32.vlgmr.msra.gmra.mxu1 %vm227_vm1, %v2262_v9  ;;  %v1179_v9 = vpop.permute.xlu1 %1178 }
 0x7e1   :  { %1815 = vmatprep.mubr.msk.f32.mxu1 %vm227_vm1, %v2182_v28 }
 0x7e4   :  { %1816 = vmatmul.mubr.msk.f32.gmra.mxu1 %vm227_vm1, %v2253_v7  ;;  %v1303_v18 = vpop.permute.xlu1 %1302 }
 0x7e5   :  { %1826 = vmatprep.mubr.msk.f32.mxu1 %vm227_vm1, %v2200_v31 }
 0x7e8   :  { %v1448_v20 = vpop.trf.xlu1 }
 0x7e9   :  { %1464 = vst.msk [vmem:[%s2497_s4] sm:$0xff] %vm651_vm3, %v1448_v20 }
 0x7ec   :  { %v1449_v21 = vpop.trf.xlu1 }
 0x7ed   :  { %1465 = vst.msk [vmem:[%s2497_s4 + $0x8] sm:$0xff] %vm651_vm3, %v1449_v21 }
 0x8a0   :  { %v1814_v51 = vpop.f32.mrf.mxu1 }
 0x8a1   :  { %v1155_v57 = vadd.f32 %v1814_v51, %v1063_v55 }
 0x8a2   :  { %v1149_v34 = vpop.f32.mrf.mxu1 }
 0x8a3   :  { %v1150_v24 = vadd.f32 %v1149_v34, %v1058_v59 }
 0x8a4   :  { %v1817_v53 = vpop.f32.mrf.mxu1 }
 0x8a5   :  { %v1165_v54 = vadd.f32 %v1817_v53, %v1073_v50 }
 0x8a6   :  { %v1159_v56 = vpop.f32.mrf.mxu1 }
 0x8a7   :  { %1908 = vtanh.f32 %v1165_v54  ;;  %v1160_v58 = vadd.f32 %v1159_v56, %v1068_v52 }
 0x8a9   :  { %1910 = vtanh.f32 %v1160_v58 }
 0x8aa   :  { %1912 = vtanh.f32 %v1155_v57 }
 0x8ab   :  { %1914 = vtanh.f32 %v1150_v24 }
 0x8b4   :  { %v1909_v28 = vpop.eup %1908 }
 0x8b5   :  { %1818 = vmatprep.subr.mxu1 %v1909_v28 }
 0x8b6   :  { %v1911_v60 = vpop.eup %1910  ;;  %1819 = vmatpush3.msra.mxu1 %v1909_v28 }
 0x8b7   :  { %1820 = vmatprep.subr.mxu1 %v1911_v60  ;;  %v1913_v31 = vpop.eup %1912 }
 0x8b8   :  { %1821 = vmatpush3.msra.mxu1 %v1911_v60  ;;  %v1915_v61 = vpop.eup %1914 }
 0x8b9   :  { %1822 = vmatprep.subr.mxu1 %v1913_v31 }
 0x8ba   :  { %1823 = vmatpush3.msra.mxu1 %v1913_v31 }
 0x8bb   :  { %1824 = vmatprep.subr.mxu1 %v1915_v61 }
 0x8bc   :  { %1825 = vmatpush3.msra.mxu1 %v1915_v61 }
 0x8bd   :  { %1827 = vmatmul.mubr.msk.f32.vlgmr.msra.gmra.mxu1 %vm227_vm1, %v2275_v11 }
 0x8be   :  { %1829 = vmatprep.mubr.msk.f32.mxu1 %vm227_vm1, %v2194_v30 }
 0x8c1   :  { %1830 = vmatmul.mubr.msk.f32.gmra.mxu1 %vm227_vm1, %v2269_v10 }
 0x97d   :  { %v1828_v0 = vpop.f32.mrf.mxu1 }
 0x97e   :  { %v1276_v7 = vadd.f32 %v1828_v0, %v1184_v5 }
 0x97f   :  { %v1270_v2 = vpop.f32.mrf.mxu1 }
 0x980   :  { %v1271_v12 = vadd.f32 %v1270_v2, %v1179_v9 }
 0x981   :  { %v1831_v3 = vpop.f32.mrf.mxu1 }
 0x982   :  { %v1286_v4 = vadd.f32 %v1831_v3, %v1194_v63 }
 0x983   :  { %v1280_v6 = vpop.f32.mrf.mxu1 }
 0x984   :  { %1916 = vtanh.f32 %v1286_v4  ;;  %v1281_v8 = vadd.f32 %v1280_v6, %v1189_v1 }
 0x986   :  { %1918 = vtanh.f32 %v1281_v8 }
 0x987   :  { %1920 = vtanh.f32 %v1276_v7 }
 0x988   :  { %1922 = vtanh.f32 %v1271_v12 }
 0x991   :  { %v1917_v30 = vpop.eup %1916 }
 0x992   :  { %1832 = vmatprep.subr.mxu0 %v1917_v30 }
 0x993   :  { %v1919_v11 = vpop.eup %1918  ;;  %1833 = vmatpush3.msra.mxu0 %v1917_v30 }
 0x994   :  { %1834 = vmatprep.subr.mxu0 %v1919_v11  ;;  %v1921_v10 = vpop.eup %1920 }
 0x995   :  { %1835 = vmatpush3.msra.mxu0 %v1919_v11  ;;  %v1923_v13 = vpop.eup %1922 }
 0x996   :  { %1836 = vmatprep.subr.mxu0 %v1921_v10 }
 0x997   :  { %1837 = vmatpush3.msra.mxu0 %v1921_v10 }
 0x998   :  { %1838 = vmatprep.subr.mxu0 %v1923_v13 }
 0x999   :  { %1839 = vmatpush3.msra.mxu0 %v1923_v13 }
 0x99a   :  { %1841 = vmatmul.mubr.msk.f32.vlgmr.msra.gmra.mxu0 %vm227_vm1, %v2206_v32  ;;  %v1450_v32 = vpop.trf.xlu1 }
 0x99b   :  { %1466 = vst.msk [vmem:[%s2497_s4 + $0x10] sm:$0xff] %vm651_vm3, %v1450_v32 }
 0x99e   :  { %v1451_v22 = vpop.trf.xlu1 }
 0x99f   :  { %1467 = vst.msk [vmem:[%s2497_s4 + $0x18] sm:$0xff] %vm651_vm3, %v1451_v22 }
 0x9a2   :  { %v1452_v23 = vpop.trf.xlu1 }
 0x9a3   :  { %1468 = vst.msk [vmem:[%s2497_s4 + $0x20] sm:$0xff] %vm651_vm3, %v1452_v23 }
 0xa5a   :  { %v1842_v14 = vpop.f32.mrf.mxu0 }
 0xa5b   :  { %v1381_v19 = vadd.f32 %v1842_v14, %v1303_v18 }
 0xa5c   :  { %v1375_v16 = vpop.f32.mrf.mxu0 }
 0xa5d   :  { %v1376_v17 = vadd.f32 %v1375_v16, %v1298_v15 }
 0xa5f   :  { %1384 = vxpose.xlu0.b32.start [1/2] (short) %v1376_v17, 128 }
 0xa63   :  { %1385 = vxpose.xlu0.b32.end [2/2] (short) %v1381_v19, 128 }
 0xa9c   :  { %1480 = vxpose.xlu0.b32.start.end [1/1] (short) %v2234_v62, 128  ;;  %v1453_v62 = vpop.trf.xlu1 }
 0xa9d   :  { %1469 = vst.msk [vmem:[%s2497_s4 + $0x28] sm:$0xff] %vm651_vm3, %v1453_v62 }
 0xaa0   :  { %v1454_v27 = vpop.trf.xlu1 }
 0xaa1   :  { %1470 = vst.msk [vmem:[%s2497_s4 + $0x30] sm:$0xff] %vm651_vm3, %v1454_v27 }
 0xaa4   :  { %v1455_v33 = vpop.trf.xlu1 }
 0xaa5   :  { %1471 = vst.msk [vmem:[%s2497_s4 + $0x38] sm:$0xff] %vm651_vm3, %v1455_v33 }
 0xaa8   :  { %v1456_v35 = vpop.trf.xlu1 }
 0xaa9   :  { %1472 = vst.msk [vmem:[%s2497_s4 + $0x40] sm:$0xff] %vm651_vm3, %v1456_v35 }
 0xaac   :  { %v1457_v36 = vpop.trf.xlu1 }
 0xaad   :  { %1473 = vst.msk [vmem:[%s2497_s4 + $0x48] sm:$0xff] %vm651_vm3, %v1457_v36 }
 0xab0   :  { %v1458_v37 = vpop.trf.xlu1 }
 0xab1   :  { %1474 = vst.msk [vmem:[%s2497_s4 + $0x50] sm:$0xff] %vm651_vm3, %v1458_v37 }
 0xab4   :  { %v1459_v38 = vpop.trf.xlu1 }
 0xab5   :  { %1475 = vst.msk [vmem:[%s2497_s4 + $0x58] sm:$0xff] %vm651_vm3, %v1459_v38 }
 0xab8   :  { %v1460_v39 = vpop.trf.xlu1 }
 0xab9   :  { %1476 = vst.msk [vmem:[%s2497_s4 + $0x60] sm:$0xff] %vm651_vm3, %v1460_v39 }
 0xabc   :  { %v1461_v40 = vpop.trf.xlu1 }
 0xabd   :  { %1477 = vst.msk [vmem:[%s2497_s4 + $0x68] sm:$0xff] %vm651_vm3, %v1461_v40 }
 0xac0   :  { %v1462_v41 = vpop.trf.xlu1 }
 0xac1   :  { %1478 = vst.msk [vmem:[%s2497_s4 + $0x70] sm:$0xff] %vm651_vm3, %v1462_v41 }
 0xac4   :  { %v1463_v42 = vpop.trf.xlu1 }
 0xac5   :  { %1479 = vst.msk [vmem:[%s2497_s4 + $0x78] sm:$0xff] %vm651_vm3, %v1463_v42 }
 0xadb   :  { %v1400_v43 = vpop.trf.xlu0 }
 0xadc   :  { %1416 = vst.msk [vmem:[%s2498_s3] sm:$0xff] %vm57_vm0, %v1400_v43 }
 0xadf   :  { %v1401_v44 = vpop.trf.xlu0 }
 0xae0   :  { %1417 = vst.msk [vmem:[%s2498_s3 + $0x8] sm:$0xff] %vm57_vm0, %v1401_v44 }
 0xae3   :  { %v1402_v45 = vpop.trf.xlu0 }
 0xae4   :  { %1418 = vst.msk [vmem:[%s2498_s3 + $0x10] sm:$0xff] %vm57_vm0, %v1402_v45 }
 0xae7   :  { %v1403_v46 = vpop.trf.xlu0 }
 0xae8   :  { %1419 = vst.msk [vmem:[%s2498_s3 + $0x18] sm:$0xff] %vm57_vm0, %v1403_v46 }
 0xaeb   :  { %v1404_v26 = vpop.trf.xlu0 }
 0xaec   :  { %1420 = vst.msk [vmem:[%s2498_s3 + $0x20] sm:$0xff] %vm57_vm0, %v1404_v26 }
 0xaef   :  { %v1405_v47 = vpop.trf.xlu0 }
 0xaf0   :  { %1421 = vst.msk [vmem:[%s2498_s3 + $0x28] sm:$0xff] %vm57_vm0, %v1405_v47 }
 0xaf3   :  { %v1406_v25 = vpop.trf.xlu0 }
 0xaf4   :  { %1422 = vst.msk [vmem:[%s2498_s3 + $0x30] sm:$0xff] %vm57_vm0, %v1406_v25 }
 0xaf7   :  { %v1407_v48 = vpop.trf.xlu0 }
 0xaf8   :  { %1423 = vst.msk [vmem:[%s2498_s3 + $0x38] sm:$0xff] %vm57_vm0, %v1407_v48 }
 0xafb   :  { %v1408_v29 = vpop.trf.xlu0 }
 0xafc   :  { %1424 = vst.msk [vmem:[%s2498_s3 + $0x40] sm:$0xff] %vm57_vm0, %v1408_v29 }
 0xaff   :  { %v1409_v49 = vpop.trf.xlu0 }
 0xb00   :  { %1425 = vst.msk [vmem:[%s2498_s3 + $0x48] sm:$0xff] %vm57_vm0, %v1409_v49 }
 0xb03   :  { %v1410_v50 = vpop.trf.xlu0 }
 0xb04   :  { %1426 = vst.msk [vmem:[%s2498_s3 + $0x50] sm:$0xff] %vm57_vm0, %v1410_v50 }
 0xb07   :  { %v1411_v51 = vpop.trf.xlu0 }
 0xb08   :  { %1427 = vst.msk [vmem:[%s2498_s3 + $0x58] sm:$0xff] %vm57_vm0, %v1411_v51 }
 0xb0b   :  { %v1412_v52 = vpop.trf.xlu0 }
 0xb0c   :  { %1428 = vst.msk [vmem:[%s2498_s3 + $0x60] sm:$0xff] %vm57_vm0, %v1412_v52 }
 0xb0f   :  { %v1413_v34 = vpop.trf.xlu0 }
 0xb10   :  { %1429 = vst.msk [vmem:[%s2498_s3 + $0x68] sm:$0xff] %vm57_vm0, %v1413_v34 }
 0xb13   :  { %v1414_v53 = vpop.trf.xlu0 }
 0xb14   :  { %1430 = vst.msk [vmem:[%s2498_s3 + $0x70] sm:$0xff] %vm57_vm0, %v1414_v53 }
 0xb17   :  { %v1415_v54 = vpop.trf.xlu0 }
 0xb18   :  { %1431 = vst.msk [vmem:[%s2498_s3 + $0x78] sm:$0xff] %vm57_vm0, %v1415_v54 }
 0xb1b   :  { %v1496_v55 = vpop.trf.xlu0 }
 0xb1c   :  { %1512 = vst.msk [vmem:[%s2499_s5] sm:$0xff] %vm651_vm3, %v1496_v55 }
 0xb1f   :  { %v1497_v56 = vpop.trf.xlu0 }
 0xb20   :  { %1513 = vst.msk [vmem:[%s2499_s5 + $0x8] sm:$0xff] %vm651_vm3, %v1497_v56 }
 0xb23   :  { %v1498_v57 = vpop.trf.xlu0 }
 0xb24   :  { %1514 = vst.msk [vmem:[%s2499_s5 + $0x10] sm:$0xff] %vm651_vm3, %v1498_v57 }
 0xb27   :  { %v1499_v58 = vpop.trf.xlu0 }
 0xb28   :  { %1515 = vst.msk [vmem:[%s2499_s5 + $0x18] sm:$0xff] %vm651_vm3, %v1499_v58 }
 0xb2b   :  { %v1500_v59 = vpop.trf.xlu0 }
 0xb2c   :  { %1516 = vst.msk [vmem:[%s2499_s5 + $0x20] sm:$0xff] %vm651_vm3, %v1500_v59 }
 0xb2f   :  { %v1501_v24 = vpop.trf.xlu0 }
 0xb30   :  { %1517 = vst.msk [vmem:[%s2499_s5 + $0x28] sm:$0xff] %vm651_vm3, %v1501_v24 }
 0xb33   :  { %v1502_v28 = vpop.trf.xlu0 }
 0xb34   :  { %1518 = vst.msk [vmem:[%s2499_s5 + $0x30] sm:$0xff] %vm651_vm3, %v1502_v28 }
 0xb37   :  { %v1503_v60 = vpop.trf.xlu0 }
 0xb38   :  { %1519 = vst.msk [vmem:[%s2499_s5 + $0x38] sm:$0xff] %vm651_vm3, %v1503_v60 }
 0xb3b   :  { %v1504_v31 = vpop.trf.xlu0 }
 0xb3c   :  { %1520 = vst.msk [vmem:[%s2499_s5 + $0x40] sm:$0xff] %vm651_vm3, %v1504_v31 }
 0xb3f   :  { %v1505_v61 = vpop.trf.xlu0 }
 0xb40   :  { %1521 = vst.msk [vmem:[%s2499_s5 + $0x48] sm:$0xff] %vm651_vm3, %v1505_v61 }
 0xb43   :  { %v1506_v63 = vpop.trf.xlu0 }
 0xb44   :  { %1522 = vst.msk [vmem:[%s2499_s5 + $0x50] sm:$0xff] %vm651_vm3, %v1506_v63 }
 0xb47   :  { %v1507_v0 = vpop.trf.xlu0 }
 0xb48   :  { %1523 = vst.msk [vmem:[%s2499_s5 + $0x58] sm:$0xff] %vm651_vm3, %v1507_v0 }
 0xb4b   :  { %v1508_v1 = vpop.trf.xlu0 }
 0xb4c   :  { %1524 = vst.msk [vmem:[%s2499_s5 + $0x60] sm:$0xff] %vm651_vm3, %v1508_v1 }
 0xb4f   :  { %v1509_v2 = vpop.trf.xlu0 }
 0xb50   :  { %1525 = vst.msk [vmem:[%s2499_s5 + $0x68] sm:$0xff] %vm651_vm3, %v1509_v2 }
 0xb53   :  { %v1510_v3 = vpop.trf.xlu0 }
 0xb54   :  { %1526 = vst.msk [vmem:[%s2499_s5 + $0x70] sm:$0xff] %vm651_vm3, %v1510_v3 }
 0xb57   :  { %v1511_v4 = vpop.trf.xlu0 }
 0xb58   :  { %1527 = vst.msk [vmem:[%s2499_s5 + $0x78] sm:$0xff] %vm651_vm3, %v1511_v4 }

</bundles_post_ra>
